<compile_context>
chip_gen: v7x
topology: tpu7x:2x2x1
jax: 0.10.0
libtpu: 0.0.40
codegen_flags: <defaults>
</compile_context>

<pallas_src>
import functools

import numpy as np
import jax
import jax.numpy as jnp
from jax.experimental import pallas as pl
from jax.experimental.pallas import tpu as pltpu

_LANE = 128


def _gdice_sums_kernel(p_ref, lbl_ref, acc_ref, *, tile_rows, n_valid, need_mask):
    """Accumulate lane-wise partial sums of p, one_hot(label), and p*one_hot(label).

    p_ref   : (1, C, tile_rows, 128)  logits tile (native dtype, cast here).
    lbl_ref : (1, 1, tile_rows, 128)  integer labels tile (native dtype, cast here).
    acc_ref : (1, 1, 3, C, 128) float32 accumulator, resident across the s grid axis:
              [0] = sum p, [1] = sum y, [2] = sum p*y  (each a (C, 128) lane partial).
    """
    s = pl.program_id(2)

    @pl.when(s == 0)
    def _init():
        acc_ref[...] = jnp.zeros_like(acc_ref)

    p = p_ref[0].astype(jnp.float32)            # (C, tile_rows, 128)
    lbl = lbl_ref[0, 0].astype(jnp.int32)       # (tile_rows, 128)
    C = p.shape[0]

    cls = jax.lax.broadcasted_iota(jnp.int32, (C, tile_rows, _LANE), 0)
    onehot = cls == lbl[None, :, :]             # (C, tile_rows, 128) bool

    if need_mask:
        # Last spatial tile overhangs the real element count (out-of-bounds block
        # contents are unspecified), so mask both p and the one-hot before summing.
        row_blk = pl.program_id(1) * pl.num_programs(2) + s
        row_i = jax.lax.broadcasted_iota(jnp.int32, (tile_rows, _LANE), 0)
        lane_i = jax.lax.broadcasted_iota(jnp.int32, (tile_rows, _LANE), 1)
        flat = (row_blk * tile_rows + row_i) * _LANE + lane_i
        valid = flat < n_valid
        onehot = onehot & valid[None, :, :]
        p = jnp.where(valid[None, :, :], p, 0.0)

    # Fold only the row (sublane) axis; keep 128-lane partials -> mostly plain VPU adds.
    acc_ref[0, 0, 0] += jnp.sum(p, axis=1)                               # sum p
    acc_ref[0, 0, 1] += jnp.sum(onehot.astype(jnp.float32), axis=1)      # sum y
    acc_ref[0, 0, 2] += jnp.sum(jnp.where(onehot, p, 0.0), axis=1)       # sum p*y


def gdice_loss(net_output, target, *, smooth=1e-5, vmem_step_bytes=8 * 1024 * 1024):
    """Pallas implementation of GDiceLoss(apply_nonlin=None, smooth=smooth)(net_output, target)."""
    # TODO(synk): the already-one-hot `gt` branch (gt.shape == net_output.shape) and the
    # optional apply_nonlin hook of the PyTorch module are not implemented; this mirrors
    # the default path (integer class labels, no nonlinearity).
    B, C = int(net_output.shape[0]), int(net_output.shape[1])
    S = int(np.prod(net_output.shape[2:]))

    logits = net_output.reshape(B, C, S)
    labels = target.reshape(B, S)               # accepts (B, X, Y, Z) or (B, 1, X, Y, Z)

    S_pad = int(pl.cdiv(S, _LANE)) * _LANE
    if S_pad != S:
        # TODO(synk): rare ragged case (S not a multiple of 128) costs one extra HBM
        # pass; the pad *values* are irrelevant because the in-kernel mask excludes them.
        logits = jnp.pad(logits, ((0, 0), (0, 0), (0, S_pad - S)))
        labels = jnp.pad(labels, ((0, 0), (0, S_pad - S)))
    R = S_pad // _LANE
    logits = logits.reshape(B, C, R, _LANE)     # free when no pad was needed
    labels = labels.reshape(B, 1, R, _LANE)

    # Adaptive tile: stream ~vmem_step_bytes of input per grid step; rows are a multiple
    # of 8 (sublane) unless a single tile covers the whole volume.
    p_bytes = logits.dtype.itemsize
    l_bytes = labels.dtype.itemsize
    bytes_per_row = _LANE * (C * p_bytes + l_bytes)
    t_rows = max(8, (vmem_step_bytes // bytes_per_row) // 8 * 8)
    if t_rows >= R:
        tile_rows, num_blocks = R, 1            # full-dim block; always legal
    else:
        tile_rows = int(t_rows)
        num_blocks = int(pl.cdiv(R, tile_rows))

    # Megacore: if the batch axis cannot feed 2 TensorCores (B == 1), split the spatial
    # chunks across a second "parallel" axis.  Only when it divides evenly, so that no
    # grid block is ever fully out of bounds.
    n_par = 2 if (B == 1 and num_blocks >= 2 and num_blocks % 2 == 0) else 1
    n_s = num_blocks // n_par
    need_mask = (num_blocks * tile_rows * _LANE) != S

    kernel = functools.partial(_gdice_sums_kernel, tile_rows=tile_rows,
                               n_valid=S, need_mask=need_mask)

    acc = pl.pallas_call(
        kernel,
        out_shape=jax.ShapeDtypeStruct((B, n_par, 3, C, _LANE), jnp.float32),
        grid_spec=pltpu.PrefetchScalarGridSpec(
            num_scalar_prefetch=0,
            grid=(B, n_par, n_s),
            in_specs=[
                pl.BlockSpec((1, C, tile_rows, _LANE),
                             lambda b, par, s: (b, 0, par * n_s + s, 0)),
                pl.BlockSpec((1, 1, tile_rows, _LANE),
                             lambda b, par, s: (b, 0, par * n_s + s, 0)),
            ],
            out_specs=pl.BlockSpec((1, 1, 3, C, _LANE),
                                   lambda b, par, s: (b, par, 0, 0, 0)),
        ),
        compiler_params=pltpu.CompilerParams(
            dimension_semantics=("parallel", "parallel", "arbitrary"),
            # Above v5e's 16 MiB / v6e's 32 MiB scoped defaults, below v7x's 64 MiB
            # physical VMEM; actual use ~2x vmem_step_bytes (double-buffered inputs).
            vmem_limit_bytes=48 * 1024 * 1024),
    )(logits, labels)

    # GDice tail math (O(B*C) scalars) -- plain JAX glue.
    totals = jnp.sum(acc, axis=(1, 4))          # fold chunk + lane partials -> (B, 3, C)
    sum_p, sum_y, sum_py = totals[:, 0], totals[:, 1], totals[:, 2]
    w = 1.0 / (sum_y + 1e-10) ** 2
    intersection = w * sum_py
    union = w * (sum_p + sum_y)
    divided = -2.0 * (jnp.sum(intersection, axis=1) + smooth) / (jnp.sum(union, axis=1) + smooth)
    return jnp.mean(divided)


def _reference(net_output, target, *, smooth=1e-5):
    """Pure-JAX reference mirroring the PyTorch GDiceLoss forward (apply_nonlin=None)."""
    C = net_output.shape[1]
    p = net_output.astype(jnp.float32)
    y = jax.nn.one_hot(target.astype(jnp.int32), C, axis=1, dtype=jnp.float32)
    axes = tuple(range(2, net_output.ndim))
    sum_y = jnp.sum(y, axis=axes)
    sum_p = jnp.sum(p, axis=axes)
    sum_py = jnp.sum(p * y, axis=axes)
    w = 1.0 / (sum_y + 1e-10) ** 2
    inter = w * sum_py
    union = w * (sum_p + sum_y)
    divided = -2.0 * (jnp.sum(inter, axis=1) + smooth) / (jnp.sum(union, axis=1) + smooth)
    return jnp.mean(divided)


if __name__ == "__main__":
    key = jax.random.PRNGKey(0)
    k1, k2 = jax.random.split(key)
    B, C, X, Y, Z = 2, 4, 8, 8, 8          # 5D input, matching einsum 'bcxyz'
    net_output = jax.random.normal(k1, (B, C, X, Y, Z), dtype=jnp.float32)
    target = jax.random.randint(k2, (B, X, Y, Z), 0, C, dtype=jnp.int32)

    loss = jax.block_until_ready(gdice_loss(net_output, target))
    ref = jax.block_until_ready(_reference(net_output, target))
    assert np.allclose(np.asarray(loss), np.asarray(ref), rtol=1e-5, atol=1e-5), (loss, ref)

    print("KERNEL_OK")
</pallas_src>

<mosaic_0001>
module attributes {stable_mosaic.version = 11 : i64} {
  func.func @_gdice_sums_kernel(%arg0: i32, %arg1: i32, %arg2: i32, %arg3: memref<1x4x4x128xf32, #tpu.memory_space<vmem>>, %arg4: memref<1x1x4x128xi32, #tpu.memory_space<vmem>>, %arg5: memref<1x1x3x4x128xf32, #tpu.memory_space<vmem>>) attributes {dimension_semantics = [#tpu.dimension_semantics<parallel>, #tpu.dimension_semantics<parallel>, #tpu.dimension_semantics<arbitrary>], iteration_bounds = array<i64: 2, 1, 1>, scalar_prefetch = 0 : i64, scratch_operands = 0 : i64, tpu.core_type = #tpu.core_type<tc>, window_params = [{transform_indices = @transform_0, window_bounds = array<i64: 1, 4, 4, 128>}, {transform_indices = @transform_1, window_bounds = array<i64: 1, 1, 4, 128>}, {transform_indices = @transform_2, window_bounds = array<i64: 1, 1, 3, 4, 128>}]} {
    %c0_i32 = arith.constant 0 : i32
    %0 = arith.cmpi eq, %arg2, %c0_i32 : i32
    %1 = arith.extui %0 : i1 to i32
    %c0_i32_0 = arith.constant 0 : i32
    %2 = arith.cmpi ne, %1, %c0_i32_0 : i32
    scf.if %2 {
      %cst_39 = arith.constant 0.000000e+00 : f32
      %36 = vector.broadcast %cst_39 : f32 to vector<1x1x3x4x128xf32>
      %c0_40 = arith.constant 0 : index
      %c0_41 = arith.constant 0 : index
      %c0_42 = arith.constant 0 : index
      %c0_43 = arith.constant 0 : index
      %c0_44 = arith.constant 0 : index
      %37 = vector.load %arg5[%c0_40, %c0_41, %c0_42, %c0_43, %c0_44] : memref<1x1x3x4x128xf32, #tpu.memory_space<vmem>>, vector<1x1x3x4x128xf32>
      tpu.vector_store %arg5[%c0_40, %c0_41, %c0_42, %c0_43, %c0_44], %36 {strides = array<i32>} : memref<1x1x3x4x128xf32, #tpu.memory_space<vmem>>, vector<1x1x3x4x128xf32>,
    } else {
    }
    %c0 = arith.constant 0 : index
    %c0_1 = arith.constant 0 : index
    %c0_2 = arith.constant 0 : index
    %c0_3 = arith.constant 0 : index
    %3 = vector.load %arg3[%c0, %c0_1, %c0_2, %c0_3] : memref<1x4x4x128xf32, #tpu.memory_space<vmem>>, vector<1x4x4x128xf32>
    %4 = vector.shape_cast %3 : vector<1x4x4x128xf32> to vector<4x4x128xf32>
    %c0_4 = arith.constant 0 : index
    %c0_5 = arith.constant 0 : index
    %c0_6 = arith.constant 0 : index
    %c0_7 = arith.constant 0 : index
    %5 = vector.load %arg4[%c0_4, %c0_5, %c0_6, %c0_7] : memref<1x1x4x128xi32, #tpu.memory_space<vmem>>, vector<1x1x4x128xi32>
    %6 = vector.shape_cast %5 : vector<1x1x4x128xi32> to vector<4x128xi32>
    %7 = tpu.iota {dimensions = array<i32: 0>} : vector<4x4x128xi32>
    %8 = vector.shape_cast %6 : vector<4x128xi32> to vector<1x4x128xi32>
    %9 = vector.broadcast %8 : vector<1x4x128xi32> to vector<4x4x128xi32>
    %10 = arith.cmpi eq, %7, %9 : vector<4x4x128xi32>
    %c0_8 = arith.constant 0 : index
    %c0_9 = arith.constant 0 : index
    %c0_10 = arith.constant 0 : index
    %c0_11 = arith.constant 0 : index
    %c0_12 = arith.constant 0 : index
    %11 = vector.load %arg5[%c0_8, %c0_9, %c0_10, %c0_11, %c0_12] : memref<1x1x3x4x128xf32, #tpu.memory_space<vmem>>, vector<1x1x1x4x128xf32>
    %12 = vector.shape_cast %11 : vector<1x1x1x4x128xf32> to vector<4x128xf32>
    %cst = arith.constant dense<0.000000e+00> : vector<4x128xf32>
    %13 = vector.multi_reduction <add>, %4, %cst [1] : vector<4x4x128xf32> to vector<4x128xf32>
    %14 = arith.addf %12, %13 : vector<4x128xf32>
    %c0_13 = arith.constant 0 : index
    %c0_14 = arith.constant 0 : index
    %c0_15 = arith.constant 0 : index
    %c0_16 = arith.constant 0 : index
    %c0_17 = arith.constant 0 : index
    %15 = vector.load %arg5[%c0_13, %c0_14, %c0_15, %c0_16, %c0_17] : memref<1x1x3x4x128xf32, #tpu.memory_space<vmem>>, vector<1x1x1x4x128xf32>
    %16 = vector.shape_cast %15 : vector<1x1x1x4x128xf32> to vector<4x128xf32>
    %17 = vector.shape_cast %14 : vector<4x128xf32> to vector<1x1x1x4x128xf32>
    tpu.vector_store %arg5[%c0_13, %c0_14, %c0_15, %c0_16, %c0_17], %17 {strides = array<i32>} : memref<1x1x3x4x128xf32, #tpu.memory_space<vmem>>, vector<1x1x1x4x128xf32>,
    %c0_18 = arith.constant 0 : index
    %c0_19 = arith.constant 0 : index
    %c1 = arith.constant 1 : index
    %c0_20 = arith.constant 0 : index
    %c0_21 = arith.constant 0 : index
    %18 = vector.load %arg5[%c0_18, %c0_19, %c1, %c0_20, %c0_21] : memref<1x1x3x4x128xf32, #tpu.memory_space<vmem>>, vector<1x1x1x4x128xf32>
    %19 = vector.shape_cast %18 : vector<1x1x1x4x128xf32> to vector<4x128xf32>
    %20 = arith.extui %10 : vector<4x4x128xi1> to vector<4x4x128xi32>
    %21 = arith.sitofp %20 : vector<4x4x128xi32> to vector<4x4x128xf32>
    %cst_22 = arith.constant dense<0.000000e+00> : vector<4x128xf32>
    %22 = vector.multi_reduction <add>, %21, %cst_22 [1] : vector<4x4x128xf32> to vector<4x128xf32>
    %23 = arith.addf %19, %22 : vector<4x128xf32>
    %c0_23 = arith.constant 0 : index
    %c0_24 = arith.constant 0 : index
    %c1_25 = arith.constant 1 : index
    %c0_26 = arith.constant 0 : index
    %c0_27 = arith.constant 0 : index
    %24 = vector.load %arg5[%c0_23, %c0_24, %c1_25, %c0_26, %c0_27] : memref<1x1x3x4x128xf32, #tpu.memory_space<vmem>>, vector<1x1x1x4x128xf32>
    %25 = vector.shape_cast %24 : vector<1x1x1x4x128xf32> to vector<4x128xf32>
    %26 = vector.shape_cast %23 : vector<4x128xf32> to vector<1x1x1x4x128xf32>
    tpu.vector_store %arg5[%c0_23, %c0_24, %c1_25, %c0_26, %c0_27], %26 {strides = array<i32>} : memref<1x1x3x4x128xf32, #tpu.memory_space<vmem>>, vector<1x1x1x4x128xf32>,
    %c0_28 = arith.constant 0 : index
    %c0_29 = arith.constant 0 : index
    %c2 = arith.constant 2 : index
    %c0_30 = arith.constant 0 : index
    %c0_31 = arith.constant 0 : index
    %27 = vector.load %arg5[%c0_28, %c0_29, %c2, %c0_30, %c0_31] : memref<1x1x3x4x128xf32, #tpu.memory_space<vmem>>, vector<1x1x1x4x128xf32>
    %28 = vector.shape_cast %27 : vector<1x1x1x4x128xf32> to vector<4x128xf32>
    %cst_32 = arith.constant 0.000000e+00 : f32
    %29 = vector.broadcast %cst_32 : f32 to vector<4x4x128xf32>
    %30 = arith.select %10, %4, %29 : vector<4x4x128xi1>, vector<4x4x128xf32>
    %cst_33 = arith.constant dense<0.000000e+00> : vector<4x128xf32>
    %31 = vector.multi_reduction <add>, %30, %cst_33 [1] : vector<4x4x128xf32> to vector<4x128xf32>
    %32 = arith.addf %28, %31 : vector<4x128xf32>
    %c0_34 = arith.constant 0 : index
    %c0_35 = arith.constant 0 : index
    %c2_36 = arith.constant 2 : index
    %c0_37 = arith.constant 0 : index
    %c0_38 = arith.constant 0 : index
    %33 = vector.load %arg5[%c0_34, %c0_35, %c2_36, %c0_37, %c0_38] : memref<1x1x3x4x128xf32, #tpu.memory_space<vmem>>, vector<1x1x1x4x128xf32>
    %34 = vector.shape_cast %33 : vector<1x1x1x4x128xf32> to vector<4x128xf32>
    %35 = vector.shape_cast %32 : vector<4x128xf32> to vector<1x1x1x4x128xf32>
    tpu.vector_store %arg5[%c0_34, %c0_35, %c2_36, %c0_37, %c0_38], %35 {strides = array<i32>} : memref<1x1x3x4x128xf32, #tpu.memory_space<vmem>>, vector<1x1x1x4x128xf32>,
    return
  }
  func.func @transform_0(%arg0: i32, %arg1: i32, %arg2: i32) -> (i32, i32, i32, i32) {
    %c1_i32 = arith.constant 1 : i32
    %0 = arith.muli %arg1, %c1_i32 : i32
    %1 = arith.addi %0, %arg2 : i32
    %c0_i32 = arith.constant 0 : i32
    %c0_i32_0 = arith.constant 0 : i32
    %c0_i32_1 = arith.constant 0 : i32
    return %arg0, %c0_i32, %1, %c0_i32_0 : i32, i32, i32, i32
  }
  func.func @transform_1(%arg0: i32, %arg1: i32, %arg2: i32) -> (i32, i32, i32, i32) {
    %c1_i32 = arith.constant 1 : i32
    %0 = arith.muli %arg1, %c1_i32 : i32
    %1 = arith.addi %0, %arg2 : i32
    %c0_i32 = arith.constant 0 : i32
    %c0_i32_0 = arith.constant 0 : i32
    %c0_i32_1 = arith.constant 0 : i32
    return %arg0, %c0_i32, %1, %c0_i32_0 : i32, i32, i32, i32
  }
  func.func @transform_2(%arg0: i32, %arg1: i32, %arg2: i32) -> (i32, i32, i32, i32, i32) {
    %c0_i32 = arith.constant 0 : i32
    %c0_i32_0 = arith.constant 0 : i32
    %c0_i32_1 = arith.constant 0 : i32
    %c0_i32_2 = arith.constant 0 : i32
    return %arg0, %arg1, %c0_i32, %c0_i32_0, %c0_i32_1 : i32, i32, i32, i32, i32
  }
}

</mosaic_0001>

<bundles_post_ra>
// kernel: tpu_custom_call.1
= control target key start
LH: loop header
LB: loop body
LE: loop exit
PB: predicated region body
PF: predicated region fallthrough
CT: control target
= control target key end

     0   :  { %7 = vsyncpa [#allocation3], 0  ;;  %s1052_s0 = inlined_call_operand.hbm [shape: f32[2,4,4,128], index: 0, kind: input, shape index: {}]   ;;  %s1053_s1 = inlined_call_operand.hbm [shape: s32[2,1,4,128], index: 1, kind: input, shape index: {}]   ;;  %s1054_s2 = inlined_call_operand.hbm [shape: f32[2,1,3,4,128], index: 2, kind: output, shape index: {}]  }
   0x1   :  { %9 = vsyncpa [#allocation3 + $0x1], 0 }
   0x2   :  { %10 = vsyncpa [#allocation6], 0 }
   0x3   :  { %12 = vsyncpa [#allocation6 + $0x1], 0 }
   0x4   :  { %13 = vsyncpa [#allocation4], 0 }
   0x5   :  { %15 = vsyncpa [#allocation4 + $0x1], 0  ;;  %s785_s9 = smov 0   ;;  %s787_s10 = smov 0  }
   0x6   :  { %s789_s11 = smov 0   ;;  %s791_s12 = smov 0  }
   0x7   :  { %s793_s13 = smov 0   ;;  %s795_s14 = smov 0  }
   0x8 LB: > { %s516_s15 = sadd.s32 4294967295, %s760_s14   ;;  %s517_s16 = sadd.s32 4294967294, %s760_s14   ;;  %s760_s14 = sphi %s795_s14, %s21_s14   ;;  %s756_s13 = sphi %s793_s13, %s1073_s13   ;;  %s752_s12 = sphi %s791_s12, %s1072_s12   ;;  %s748_s11 = sphi %s789_s11, %s1071_s11   ;;  %s744_s10 = sphi %s787_s10, %s1070_s10   ;;  %s740_s9 = sphi %s785_s9, %s1069_s9  }
   0x9   : > { %s40_s17 = sadd.s32 1, %s756_s13  ;;  %s51_s18 = sadd.s32 1, %s748_s11 }
   0xa   : > { %p42_p0 = scmp.ge.s32.totalorder %s40_s17, 2  ;;  %p58_p1 = scmp.ne.s32.totalorder %s748_s11, %s744_s10 }
   0xb   : > { %p59_p2 = scmp.eq.s32.totalorder %s760_s14, 0  ;;  %p64_p3 = scmp.ne.s32.totalorder %s744_s10, %s740_s9 }
   0xc   : > { %s1075_s17 = smov (%p42_p0, %s40_s17), 0  ;;  %p65_p5 = scmp.eq.s32.totalorder %s516_s15, 0 }
   0xd   : > { %p826_p4 = por %p59_p2, %p58_p1  ;;  %s46_s20 = ssub.s32 %s756_s13, %s1075_s17 }
   0xe   : > { %p120_p6 = scmp.eq.s32.totalorder %s516_s15, 1  ;;  %p49_p7 = scmp.eq.s32.totalorder %s46_s20, 0 }
   0xf   : > { %p832_p8 = por %p65_p5, %p64_p3  ;;  %p126_p10 = scmp.eq.s32.totalorder %s517_s16, 1 }
  0x10   : > { %p836_p9 = por %p120_p6, %p58_p1  ;;  %p559_p13 = scmp.lt.s32.totalorder %s760_s14, 2 }
  0x11   : > { %s1058_s21 = scalar_select %p832_p8, 1, 0 }
  0x12   : > { %s1059_s22 = scalar_select %p836_p9, 1, 0 }
  0x13   : > { %s841_s23 = scalar_select %p49_p7, %s748_s11, %s51_s18  }
  0x14   : > { %p843_p11 = por %p126_p10, %p64_p3  ;;  %s850_s25 = sand.u32 1, %s748_s11  }
  0x15   : > { %s520_s26 = sshll.u32 %s850_s25, 4  ;;  %s539_s27 = sshll.u32 %s756_s13, 8 }
  0x16   : > { %s1060_s24 = scalar_select %p843_p11, 1, 0 }
  0x17   : > { %s857_s30 = scalar_lea.hbm %s1052_s0, %s539_s27  ;;  %s150_s3 = scalar_lea.vmem [#allocation2], %s520_s26 }
  0x18   : > { %s159_s4 = sshll.u32 %s150_s3, 4  ;;  %p863_p0 = pnand %p559_p13, %p826_p4  ;;  %s859_s4 = int_to_ptr.vmem [resolvable:$true] %s159_s4 }
  0x19   : > { %s147_s6 = scalar_lea.sflag [#allocation3], %s850_s25  ;;  %s614_s7 = scalar_lea.hbm %s857_s30, 256 }
  0x1a   : > { %p615_p2 = scmp.ne.s32.totalorder %s857_s30, %s614_s7  ;;  %p616_p3 = pneg %p863_p0 }
  0x1b   : > { %s619_s16 = scalar_lea.hbm %s1052_s0, 512  ;;  %p620_p4 = scmp.lt.u32.totalorder %s857_s30, %s1052_s0 }
  0x1c   : > { %p617_p5 = pnand %p616_p3, %p615_p2  ;;  %p621_p7 = scmp.lt.u32.totalorder %s619_s16, %s614_s7 }
  0x1d   : > { %p623_p13 = scmp.lt.u32.totalorder %s614_s7, %s857_s30 }
  0x1e   : > { %p618_p6 = pneg %p617_p5  ;;  %p622_p10 = por %p621_p7, %p620_p4 }
  0x20   : > { %p624_p12 = por %p623_p13, %p622_p10 }
  0x22   : > { %p625_p1 = pnand %p624_p12, %p618_p6 }
  0x24   : > { %628 = shalt.err (!%p625_p1)
}
  0x25   : > { %s629_s20 = scalar_lea.vmem %s859_s4, 256  ;;  %s762_s26 = smov [#allocation2]  }
  0x26   : > { %p630_p2 = scmp.ne.s32.totalorder %s859_s4, %s629_s20  ;;  %s634_s27 = sshll.u32 %s762_s26, 4  ;;  %s635_s27 = int_to_ptr.vmem [resolvable:$false] %s634_s27 }
  0x27   : > { %s636_s28 = scalar_lea.vmem %s635_s27, 512  ;;  %p637_p9 = scmp.lt.s32.totalorder %s859_s4, %s635_s27 }
  0x28   : > { %p632_p5 = pnand %p630_p2, %p616_p3  ;;  %p638_p4 = scmp.lt.s32.totalorder %s636_s28, %s629_s20 }
  0x2a   : > { %p633_p11 = pneg %p632_p5  ;;  %p639_p7 = por %p638_p4, %p637_p9 }
  0x2c   : > { %p640_p10 = pnand %p639_p7, %p633_p11 }
  0x2e   : > { %643 = shalt.err (!%p640_p10)
}
  0x2f   : > { %s763_s29 = smov 64   ;;  %s764_s3 = smov 4  }
  0x30   : > { %551 = dma.hbm_to_vmem [thread:$0]  (!%p863_p0), %s857_s30, 256, %s859_s4, %s147_s6, %s763_s29, %s763_s29, %s764_s3  }
  0x31   : > { %p187_p12 = scmp.lt.s32.totalorder %s760_s14, 3  ;;  %s523_s7 = sshll.u32 %s850_s25, 2 }
  0x32   : > { %s524_s8 = sshll.u32 %s756_s13, 6  ;;  %p1062_p9 = scmp.ge.s32.totalorder %s760_s14, 1 }
  0x33   : > { %s908_s19 = scalar_lea.hbm %s1053_s1, %s524_s8  ;;  %s173_s20 = scalar_lea.vmem [#allocation5], %s523_s7 }
  0x34   : > { %p901_p11 = pnand %p1062_p9, %p187_p12  ;;  %s182_s26 = sshll.u32 %s173_s20, 4  ;;  %s183_s26 = int_to_ptr.vmem [resolvable:$true] %s182_s26 }
  0x35   : > { %s170_s30 = scalar_lea.sflag [#allocation6], %s850_s25  ;;  %s644_s4 = scalar_lea.hbm %s908_s19, 64 }
  0x36   : > { %s1063_s15 = scalar_select %p901_p11, 1, 0 }
  0x37   : > { %p645_p1 = scmp.ne.s32.totalorder %s908_s19, %s644_s4  ;;  %s649_s28 = scalar_lea.hbm %s1053_s1, 128 }
  0x38   : > { %p650_p2 = scmp.lt.u32.totalorder %s908_s19, %s1053_s1  ;;  %p651_p5 = scmp.lt.u32.totalorder %s649_s28, %s644_s4 }
  0x39   : > { %p647_p6 = pnand %p645_p1, %p616_p3  ;;  %p653_p7 = scmp.lt.u32.totalorder %s644_s4, %s908_s19 }
  0x3a   : > { %p652_p4 = por %p651_p5, %p650_p2 }
  0x3b   : > { %p648_p13 = pneg %p647_p6 }
  0x3c   : > { %p654_p10 = por %p653_p7, %p652_p4 }
  0x3e   : > { %p655_p12 = pnand %p654_p10, %p648_p13 }
  0x40   : > { %658 = shalt.err (!%p655_p12)
}
  0x41   : > { %s659_s25 = scalar_lea.vmem %s183_s26, 64  ;;  %s765_s7 = smov [#allocation5]  }
  0x42   : > { %p660_p9 = scmp.ne.s32.totalorder %s183_s26, %s659_s25  ;;  %s664_s8 = sshll.u32 %s765_s7, 4  ;;  %s665_s8 = int_to_ptr.vmem [resolvable:$false] %s664_s8 }
  0x43   : > { %s666_s16 = scalar_lea.vmem %s665_s8, 128  ;;  %p667_p8 = scmp.lt.s32.totalorder %s183_s26, %s665_s8 }
  0x44   : > { %p662_p1 = pnand %p660_p9, %p616_p3  ;;  %p668_p11 = scmp.lt.s32.totalorder %s666_s16, %s659_s25 }
  0x46   : > { %p663_p6 = pneg %p662_p1  ;;  %p669_p2 = por %p668_p11, %p667_p8 }
  0x48   : > { %p670_p5 = pnand %p669_p2, %p663_p6 }
  0x4a   : > { %673 = shalt.err (!%p670_p5)
}
  0x4b   : > { %554 = dma.hbm_to_vmem [thread:$0]  (!%p863_p0), %s908_s19, 64, %s183_s26, %s170_s30  }
  0x4c   : > { %p1064_p13 = scmp.ne.s32.totalorder %s1063_s15, 0 }
  0x4d   : > { %s933_s18 = sand.u32 (!%p1064_p13), 1, %s744_s10   ;;  %p1065_p3 = scmp.ne.s32.totalorder (!%p1064_p13), %s1058_s21, 0 }
  0x4e   : > { %191 = sbr.rel (%p1064_p13) target bundleno = 143 (0x8f), region = 28  ;;  %s526_s20 = sshll.u32 (!%p1064_p13), %s933_s18, 4 }
  0x4f   : > { %s194_s4 = scalar_lea.sflag (!%p1064_p13), [#allocation3], %s933_s18  ;;  %s197_s6 = scalar_lea.vmem (!%p1064_p13), [#allocation2], %s526_s20 }
  0x55   : > { %727 = dma.done.wait (%p1065_p3), %s194_s4, 256  }
  0x56   : > { %729 = vsyncadd (%p1065_p3), %s194_s4, 4294967040  ;;  %s527_s5 = sshll.u32 %s933_s18, 2  ;;  %s203_s15 = scalar_lea.sflag [#allocation6], %s933_s18 }
  0x57   : > { %s206_s19 = scalar_lea.vmem [#allocation5], %s527_s5 }
  0x58   : > { %731 = dma.done.wait (%p1065_p3), %s203_s15, 64  }
  0x59   : > { %733 = vsyncadd (%p1065_p3), %s203_s15, 4294967232  ;;  %s540_s26 = smul.u32 12, %s933_s18  ;;  %v766_v0 = vmov 0.0   ;;  %vm251_vm0 = vcmask 1043456   ;;  %v241_v1 = vld [vmem:[%s197_s6] sm:$0xf] }
  0x5a   : > { %v242_v2 = vld [vmem:[%s197_s6 + $0x4] sm:$0xf]  ;;  %v953_v3 = vld [vmem:[%s197_s6 + $0x8] sm:$0xf]  ;;  %v955_v4 = vld [vmem:[%s197_s6 + $0xc] sm:$0xf] }
  0x5b   : > { %s948_s30 = scalar_lea.vmem [#allocation7], %s540_s26  ;;  %v252_v5 = vsel %vm251_vm0, %v241_v1, 0.0  ;;  %v259_v6 = vsel %vm251_vm0, %v242_v2, 0.0  ;;  %v266_v7 = vsel %vm251_vm0, %v953_v3, 0.0  ;;  %v273_v11 = vsel %vm251_vm0, %v955_v4, 0.0  ;;  %s541_s21 = smul.u32 192, %s752_s12 }
  0x5c   : > { %238 = vst [vmem:[%s948_s30] sm:$0xf] %v766_v0  ;;  %239 = vst [vmem:[%s948_s30 + $0x4] sm:$0xf] %v766_v0  ;;  %v253_v8 = vrot.slane %v252_v5, 4  ;;  %v260_v9 = vrot.slane %v259_v6, 4  ;;  %v267_v10 = vrot.slane %v266_v7, 4 }
  0x5d   : > { %240 = vst [vmem:[%s948_s30 + $0x8] sm:$0xf] %v766_v0  ;;  %v245_v12 = vld [vmem:[%s206_s19] sm:$0xf]  ;;  %v274_v13 = vrot.slane %v273_v11, 4  ;;  %vm284_vm1 = vcmask 1041409   ;;  %s1000_s3 = scalar_lea.hbm %s1054_s2, %s541_s21 }
  0x5e   : > { %vm246_vm2 = vcmp.eq.s32.totalorder %v245_v12, 0  ;;  %vm247_vm3 = vcmp.eq.s32.totalorder %v245_v12, 1  ;;  %vm248_vm4 = vcmp.eq.s32.totalorder %v245_v12, 2  ;;  %v254_v14 = vadd.f32 %v253_v8, %v252_v5  ;;  %s401_s27 = sshll.u32 %s948_s30, 4  ;;  %s386_s12 = scalar_lea.sflag [#allocation4], %s933_s18  ;;  %s1002_s27 = int_to_ptr.vmem [resolvable:$true] %s401_s27 }
  0x5f   : > { %v261_v15 = vadd.f32 %v260_v9, %v259_v6  ;;  %v268_v16 = vadd.f32 %v267_v10, %v266_v7  ;;  %vm286_vm5 = vcmask 1042434   ;;  %vm249_vm6 = vcmp.eq.s32.totalorder %v245_v12, 3  ;;  %s674_s25 = scalar_lea.vmem %s1002_s27, 192  ;;  %p1066_p0 = scmp.ne.s32.totalorder %s1059_s22, 0 }
  0x60   : > { %v275_v17 = vadd.f32 %v274_v13, %v273_v11  ;;  %vm288_vm7 = vcmask 1043459   ;;  %v529_v18 = vsel %vm246_vm2, 1.0, %v766_v0  ;;  %v530_v19 = vsel %vm247_vm3, 1.0, %v766_v0  ;;  %p675_p8 = scmp.ne.s32.totalorder %s1002_s27, %s674_s25  ;;  %s767_s7 = smov [#allocation7]  }
  0x61   : > { %v531_v20 = vsel %vm248_vm4, 1.0, %v766_v0  ;;  %v255_v21 = vrot.slane %v254_v14, 2  ;;  %v262_v22 = vrot.slane %v261_v15, 2  ;;  %v269_v23 = vrot.slane %v268_v16, 2  ;;  %s678_s8 = sshll.u32 %s767_s7, 4  ;;  %s679_s8 = int_to_ptr.vmem [resolvable:$false] %s678_s8 }
  0x62   : > { %v532_v24 = vsel %vm249_vm6, 1.0, %v766_v0  ;;  %v276_v25 = vrot.slane %v275_v17, 2  ;;  %v303_v26 = vsel %vm251_vm0, %v529_v18, 0.0  ;;  %v310_v27 = vsel %vm251_vm0, %v530_v19, 0.0  ;;  %p676_p11 = pnand %p675_p8, %p1066_p0  ;;  %s680_s16 = scalar_lea.vmem %s679_s8, 384 }
  0x63   : > { %v317_v28 = vsel %vm251_vm0, %v531_v20, 0.0  ;;  %v256_v29 = vadd.f32 %v255_v21, %v254_v14  ;;  %v263_v30 = vadd.f32 %v262_v22, %v261_v15  ;;  %v270_v31 = vadd.f32 %v269_v23, %v268_v16  ;;  %v250_v53 = vld [vmem:[%s948_s30] sm:$0xf]  ;;  %p681_p7 = scmp.lt.s32.totalorder %s1002_s27, %s679_s8  ;;  %p682_p10 = scmp.lt.s32.totalorder %s680_s16, %s674_s25 }
  0x64   : > { %v304_v32 = vrot.slane %v303_v26, 4  ;;  %v277_v33 = vadd.f32 %v276_v25, %v275_v17  ;;  %v311_v34 = vrot.slane %v310_v27, 4  ;;  %v318_v35 = vrot.slane %v317_v28, 4  ;;  %v528_v17 = vld [vmem:[%s948_s30 + $0x4] sm:$0xf]  ;;  %p677_p4 = pneg %p676_p11 }
  0x65   : > { %v324_v36 = vsel %vm251_vm0, %v532_v24, 0.0  ;;  %v257_v37 = vrot.slane %v256_v29, 1  ;;  %v264_v38 = vrot.slane %v263_v30, 1  ;;  %v271_v39 = vrot.slane %v270_v31, 1  ;;  %p683_p12 = por %p682_p10, %p681_p7 }
  0x66   : > { %v305_v40 = vadd.f32 %v304_v32, %v303_v26  ;;  %v278_v41 = vrot.slane %v277_v33, 1  ;;  %v312_v42 = vadd.f32 %v311_v34, %v310_v27  ;;  %v319_v43 = vadd.f32 %v318_v35, %v317_v28 }
  0x67   : > { %v325_v44 = vrot.slane %v324_v36, 4  ;;  %v258_v45 = vadd.f32 %v257_v37, %v256_v29  ;;  %v265_v46 = vadd.f32 %v264_v38, %v263_v30  ;;  %v272_v47 = vadd.f32 %v271_v39, %v270_v31  ;;  %p684_p9 = pnand %p683_p12, %p677_p4 }
  0x68   : > { %v306_v48 = vrot.slane %v305_v40, 2  ;;  %v279_v49 = vadd.f32 %v278_v41, %v277_v33  ;;  %v313_v50 = vrot.slane %v312_v42, 2  ;;  %v320_v51 = vrot.slane %v319_v43, 2 }
  0x69   : > { %v326_v52 = vadd.f32 %v325_v44, %v324_v36  ;;  %v285_v54 = vsel %vm284_vm1, %v265_v46, %v258_v45  ;;  %v343_v56 = vsel %vm246_vm2, %v241_v1, 0.0  ;;  %v344_v57 = vsel %vm247_vm3, %v242_v2, 0.0  ;;  %v534_v44 = vld [vmem:[%s948_s30 + $0x8] sm:$0xf] }
  0x6a   : > { %v307_v55 = vadd.f32 %v306_v48, %v305_v40  ;;  %v287_v58 = vsel %vm286_vm5, %v272_v47, %v285_v54  ;;  %v314_v59 = vadd.f32 %v313_v50, %v312_v42  ;;  %v321_v60 = vadd.f32 %v320_v51, %v319_v43 }
  0x6b   : > { %v327_v61 = vrot.slane %v326_v52, 2  ;;  %v289_v62 = vsel %vm288_vm7, %v279_v49, %v287_v58  ;;  %v345_v0 = vsel %vm248_vm4, %v953_v3, 0.0  ;;  %v346_v5 = vsel %vm249_vm6, %v955_v4, 0.0 }
  0x6c   : > { %v308_v63 = vrot.slane %v307_v55, 1  ;;  %v291_v6 = vadd.f32 %v289_v62, %v250_v53  ;;  %v315_v1 = vrot.slane %v314_v59, 1  ;;  %v322_v7 = vrot.slane %v321_v60, 1 }
  0x6d   : > { %v328_v2 = vadd.f32 %v327_v61, %v326_v52  ;;  %v347_v9 = vsel %vm251_vm0, %v343_v56, 0.0  ;;  %v354_v10 = vsel %vm251_vm0, %v344_v57, 0.0  ;;  %v361_v11 = vsel %vm251_vm0, %v345_v0, 0.0 }
  0x6e   : > { %v309_v8 = vadd.f32 %v308_v63, %v307_v55  ;;  %292 = vst [vmem:[%s948_s30] sm:$0xf] %v291_v6  ;;  %v316_v13 = vadd.f32 %v315_v1, %v314_v59  ;;  %v323_v14 = vadd.f32 %v322_v7, %v321_v60  ;;  %v348_v3 = vrot.slane %v347_v9, 4 }
  0x6f   : > { %v329_v15 = vrot.slane %v328_v2, 1  ;;  %v355_v16 = vrot.slane %v354_v10, 4  ;;  %v362_v12 = vrot.slane %v361_v11, 4  ;;  %v368_v4 = vsel %vm251_vm0, %v346_v5, 0.0 }
  0x70   : > { %v335_v19 = vsel %vm284_vm1, %v316_v13, %v309_v8  ;;  %v349_v20 = vadd.f32 %v348_v3, %v347_v9  ;;  %v369_v21 = vrot.slane %v368_v4, 4 }
  0x71   : > { %v330_v18 = vadd.f32 %v329_v15, %v328_v2  ;;  %v336_v22 = vsel %vm286_vm5, %v323_v14, %v335_v19  ;;  %v356_v23 = vadd.f32 %v355_v16, %v354_v10  ;;  %v363_v24 = vadd.f32 %v362_v12, %v361_v11 }
  0x72   : > { %v350_v26 = vrot.slane %v349_v20, 2  ;;  %v370_v27 = vadd.f32 %v369_v21, %v368_v4 }
  0x73   : > { %v337_v25 = vsel %vm288_vm7, %v330_v18, %v336_v22  ;;  %v357_v29 = vrot.slane %v356_v23, 2  ;;  %v364_v30 = vrot.slane %v363_v24, 2 }
  0x74   : > { %v339_v28 = vadd.f32 %v528_v17, %v337_v25  ;;  %v351_v31 = vadd.f32 %v350_v26, %v349_v20  ;;  %v371_v32 = vrot.slane %v370_v27, 2 }
  0x75   : > { %v358_v33 = vadd.f32 %v357_v29, %v356_v23  ;;  %v365_v34 = vadd.f32 %v364_v30, %v363_v24 }
  0x76   : > { %533 = vst [vmem:[%s948_s30 + $0x4] sm:$0xf] %v339_v28  ;;  %v352_v35 = vrot.slane %v351_v31, 1  ;;  %v372_v36 = vadd.f32 %v371_v32, %v370_v27 }
  0x77   : > { %v359_v37 = vrot.slane %v358_v33, 1  ;;  %v366_v38 = vrot.slane %v365_v34, 1 }
  0x78   : > { %v353_v39 = vadd.f32 %v352_v35, %v351_v31  ;;  %v373_v40 = vrot.slane %v372_v36, 1 }
  0x79   : > { %v360_v41 = vadd.f32 %v359_v37, %v358_v33  ;;  %v367_v42 = vadd.f32 %v366_v38, %v365_v34 }
  0x7a   : > { %v374_v43 = vadd.f32 %v373_v40, %v372_v36 }
  0x7b   : > { %v379_v45 = vsel %vm284_vm1, %v360_v41, %v353_v39 }
  0x7c   : > { %v380_v46 = vsel %vm286_vm5, %v367_v42, %v379_v45 }
  0x7d   : > { %v381_v47 = vsel %vm288_vm7, %v374_v43, %v380_v46 }
  0x7e   : > { %v383_v48 = vadd.f32 %v534_v44, %v381_v47 }
  0x80   : > { %535 = vst [vmem:[%s948_s30 + $0x8] sm:$0xf] %v383_v48 }
  0x81   : > { %687 = shalt.err (!%p684_p9)
}
  0x82   : > { %s688_s20 = scalar_lea.hbm %s1000_s3, 192  ;;  %s692_s5 = scalar_lea.hbm %s1054_s2, 384 }
  0x83   : > { %p689_p1 = scmp.ne.s32.totalorder %s1000_s3, %s688_s20  ;;  %p693_p5 = scmp.lt.u32.totalorder %s1000_s3, %s1054_s2 }
  0x84   : > { %p694_p13 = scmp.lt.u32.totalorder %s692_s5, %s688_s20  ;;  %p696_p8 = scmp.lt.u32.totalorder %s688_s20, %s1000_s3 }
  0x85   : > { %p690_p6 = pnand %p689_p1, %p1066_p0 }
  0x86   : > { %p695_p3 = por %p694_p13, %p693_p5 }
  0x87   : > { %p691_p2 = pneg %p690_p6 }
  0x88   : > { %p697_p11 = por %p696_p8, %p695_p3 }
  0x8a   : > { %p698_p4 = pnand %p697_p11, %p691_p2 }
  0x8c   : > { %701 = shalt.err (!%p698_p4)
}
  0x8d   : > { %s768_s26 = smov 64   ;;  %s769_s30 = smov 4  }
  0x8e   : > { %546 = dma.vmem_to_hbm [thread:$0]  (%p1066_p0), %s1002_s27, 192, %s1000_s3, %s386_s12, %s768_s26, %s768_s26, %s769_s30  }
  0x8f PF: > { %s416_s21 = sand.u32 1, %s740_s9   ;;  %p1067_p7 = scmp.ne.s32.totalorder %s1060_s24, 0 }
  0x90   : > { %p1068_p10 = scmp.ge.s32.totalorder %s760_s14, 2  ;;  %s417_s28 = scalar_lea.sflag [#allocation4], %s416_s21 }
  0x92   : > { %p556_p12 = pnand %p1068_p10, %p1067_p7 }
  0x94   : > { %735 = dma.done.wait (!%p556_p12), %s417_s28, 192  }
  0x95   : > { %737 = vsyncadd (!%p556_p12), %s417_s28, 4294967104  ;;  %s21_s14 = sadd.s32 1, %s760_s14   ;;  %s1069_s9 = smov %s744_s10 }
  0x96   : > { %p18_p9 = scmp.ge.s32.totalorder %s21_s14, 4   ;;  %s1070_s10 = smov %s748_s11 }
  0x97   : > { %s1071_s11 = smov %s841_s23  ;;  %s1072_s12 = smov %s756_s13 }
  0x98   : > { %s1073_s13 = smov %s1075_s17  ;;  %20 = sbr.rel (!%p18_p9) target bundleno = 8 (0x8), region = 92 }
  0x9f   :  { %422 = vsyncpa [#allocation3], 1 }
  0xa0   :  { %424 = vsyncpa [#allocation3 + $0x1], 1 }
  0xa1   :  { %425 = vsyncpa [#allocation6], 1 }
  0xa2   :  { %427 = vsyncpa [#allocation6 + $0x1], 1 }
  0xa3   :  { %428 = vsyncpa [#allocation4], 1 }
  0xa4   :  { %430 = vsyncpa [#allocation4 + $0x1], 1 }

</bundles_post_ra>
